<compile_context>
chip_gen: v5e
topology: v5e:2x2
jax: 0.10.0
libtpu: 0.0.40
codegen_flags: <defaults>
</compile_context>

<pallas_src>
import functools

import jax
import jax.numpy as jnp
from jax.experimental import pallas as pl
from jax.experimental.pallas import tpu as pltpu


def _score_kernel(z_ref, w1_ref, b1_ref, w2_ref, beta_ref, acc_ref, *, inv_n):
    """Accumulate per-metapath score sums over N-tiles; finalize the softmax."""
    i = pl.program_id(0)

    @pl.when(i == 0)
    def _init():
        acc_ref[...] = jnp.zeros_like(acc_ref)

    M, tn, D = z_ref.shape

    # Fused projection over all metapaths of this node tile: one MXU matmul,
    # one b1 broadcast, one tanh, one w2 multiply.
    z2 = z_ref[...].reshape(M * tn, D).astype(jnp.float32)            # free merge
    h = jnp.tanh(
        jnp.dot(z2, w1_ref[...], preferred_element_type=jnp.float32)
        + b1_ref[...])                                                # (M*tn, H)
    hw = h * w2_ref[...]                                              # (M*tn, H)

    # Per-metapath partial sums over the node axis (aligned static slices).
    parts = [jnp.sum(hw[m * tn:(m + 1) * tn, :], axis=0, keepdims=True)
             for m in range(M)]                                       # M x (1, H)
    acc_ref[...] += jnp.concatenate(parts, axis=0)                    # (M, H)

    @pl.when(i == pl.num_programs(0) - 1)
    def _finalize():
        # w = mean over nodes of the per-metapath scores (1/N = temperature).
        w = jnp.sum(acc_ref[...], axis=1, keepdims=True) * inv_n      # (M, 1)
        mx = jnp.max(w, axis=0, keepdims=True)                        # (1, 1)
        e = jnp.exp(w - mx)                                           # (M, 1)
        beta_ref[...] = e / jnp.sum(e, axis=0, keepdims=True)         # exact div


def _weighted_sum_kernel(beta_ref, z_ref, out_ref):
    """out[n, :] = sum_m beta[m] * z[m, n, :] for one node tile."""
    M = z_ref.shape[0]
    # Seed the accumulator with the m=0 term: no zeros init, one fewer vadd pass.
    acc = z_ref[0].astype(jnp.float32) * beta_ref[0, 0]
    for m in range(1, M):
        acc = acc + z_ref[m].astype(jnp.float32) * beta_ref[m, 0]
    out_ref[...] = acc.astype(out_ref.dtype)


def semantic_attention(z, w1, b1, w2, *, tile_n=128):
    """z: (N, M, D); w1: (D, H); b1: (1, H); w2: (1, H)  ->  (N, D)."""
    N, M, D = z.shape
    H = w1.shape[1]
    tn = min(tile_n, N)
    assert N % tn == 0 and tn % 8 == 0, (
        "node count must be a multiple of an 8-aligned node tile")

    # Metapath-major layout: each metapath slice of a node tile is a
    # contiguous lane-dense (tn, D) block.
    z_t = jnp.transpose(z, (1, 0, 2))                                 # (M, N, D)
    grid = (N // tn,)

    # VMEM budget: double-buffered z tile + out tile + matmul temporaries,
    # clamped to stay inside v7x's smaller (64 MiB physical / 32 MiB scoped) VMEM.
    tile_bytes = M * tn * D * z.dtype.itemsize
    vmem_limit = int(min(max(6 * tile_bytes + (4 << 20), 16 << 20), 32 << 20))

    # ---- Phase 1: per-metapath mean score + softmax -> beta (M, 1) f32 ----
    beta = pl.pallas_call(
        functools.partial(_score_kernel, inv_n=1.0 / N),
        out_shape=jax.ShapeDtypeStruct((M, 1), jnp.float32),
        grid=grid,
        in_specs=[
            pl.BlockSpec((M, tn, D), lambda i: (0, i, 0)),
            pl.BlockSpec((D, H), lambda i: (0, 0)),
            pl.BlockSpec((1, H), lambda i: (0, 0)),
            pl.BlockSpec((1, H), lambda i: (0, 0)),
        ],
        out_specs=pl.BlockSpec((M, 1), lambda i: (0, 0)),
        scratch_shapes=[pltpu.VMEM((M, H), jnp.float32)],
        compiler_params=pltpu.CompilerParams(
            dimension_semantics=("arbitrary",),   # global reduction over N-tiles
            vmem_limit_bytes=vmem_limit),
    )(z_t, w1, b1, w2)

    # ---- Phase 2: out[n] = sum_m beta[m] * z[n, m, :], tiled over N ----
    out = pl.pallas_call(
        _weighted_sum_kernel,
        out_shape=jax.ShapeDtypeStruct((N, D), z.dtype),
        grid=grid,
        in_specs=[
            pl.BlockSpec(memory_space=pltpu.MemorySpace.SMEM),        # beta scalars
            pl.BlockSpec((M, tn, D), lambda i: (0, i, 0)),
        ],
        out_specs=pl.BlockSpec((tn, D), lambda i: (i, 0)),
        compiler_params=pltpu.CompilerParams(
            dimension_semantics=("parallel",),
            vmem_limit_bytes=vmem_limit),
    )(beta, z_t)
    return out


def semantic_attention_reference(z, w1, b1, w2):
    # Pure-JAX reference mirroring the PyTorch forward exactly.
    h = jnp.tanh(jnp.einsum('nmd,dh->nmh', z, w1) + b1[0])            # (N, M, H)
    s = jnp.einsum('nmh,h->nm', h, w2[0])[..., None]                  # (N, M, 1)
    w = s.mean(axis=0)                                                # (M, 1)
    beta = jax.nn.softmax(w, axis=0)                                  # (M, 1)
    return (beta[None, :, :] * z).sum(axis=1)                         # (N, D)


if __name__ == "__main__":
    # Small shapes consistent with the module: N nodes, M metapaths,
    # in_size features, hidden = module's default hidden_size (128).
    N, M, in_size, hidden = 512, 4, 128, 128

    key = jax.random.PRNGKey(0)
    kz, kw1, kb1, kw2 = jax.random.split(key, 4)

    # Deterministic synthetic parameter init (PyTorch-Linear-like uniform ranges).
    lim1 = 1.0 / jnp.sqrt(in_size)
    lim2 = 1.0 / jnp.sqrt(hidden)
    z = jax.random.normal(kz, (N, M, in_size), dtype=jnp.float32)
    w1 = jax.random.uniform(kw1, (in_size, hidden), jnp.float32, -lim1, lim1)
    b1 = jax.random.uniform(kb1, (1, hidden), jnp.float32, -lim1, lim1)
    w2 = jax.random.uniform(kw2, (1, hidden), jnp.float32, -lim2, lim2)

    out = jax.block_until_ready(semantic_attention(z, w1, b1, w2))
    ref = jax.block_until_ready(semantic_attention_reference(z, w1, b1, w2))

    assert out.shape == (N, in_size) and out.dtype == z.dtype
    max_err = jnp.max(jnp.abs(out - ref))
    assert jnp.allclose(out, ref, rtol=1e-5, atol=1e-5), (
        f"max abs diff = {max_err}")
    print("KERNEL_OK")
</pallas_src>

<mosaic_0001>
module attributes {stable_mosaic.version = 11 : i64} {
  func.func @_score_kernel(%arg0: i32, %arg1: memref<4x128x128xf32, #tpu.memory_space<vmem>>, %arg2: memref<128x128xf32, #tpu.memory_space<vmem>>, %arg3: memref<1x128xf32, #tpu.memory_space<vmem>>, %arg4: memref<1x128xf32, #tpu.memory_space<vmem>>, %arg5: memref<4x1xf32, #tpu.memory_space<vmem>>, %arg6: memref<4x128xf32, #tpu.memory_space<vmem>>) attributes {dimension_semantics = [#tpu.dimension_semantics<arbitrary>], iteration_bounds = array<i64: 4>, scalar_prefetch = 0 : i64, scratch_operands = 1 : i64, tpu.core_type = #tpu.core_type<tc>, window_params = [{transform_indices = @transform_0, window_bounds = array<i64: 4, 128, 128>}, {pipeline_mode = #tpu.pipeline_mode<synchronous>, transform_indices = @transform_1, window_bounds = array<i64: 128, 128>}, {pipeline_mode = #tpu.pipeline_mode<synchronous>, transform_indices = @transform_2, window_bounds = array<i64: 1, 128>}, {pipeline_mode = #tpu.pipeline_mode<synchronous>, transform_indices = @transform_3, window_bounds = array<i64: 1, 128>}, {pipeline_mode = #tpu.pipeline_mode<synchronous>, transform_indices = @transform_4, window_bounds = array<i64: 4, 1>}]} {
    %c0_i32 = arith.constant 0 : i32
    %0 = arith.cmpi eq, %arg0, %c0_i32 : i32
    %1 = arith.extui %0 : i1 to i32
    %c0_i32_0 = arith.constant 0 : i32
    %2 = arith.cmpi ne, %1, %c0_i32_0 : i32
    scf.if %2 {
      %cst_18 = arith.constant 0.000000e+00 : f32
      %33 = vector.broadcast %cst_18 : f32 to vector<4x128xf32>
      %c0_19 = arith.constant 0 : index
      %c0_20 = arith.constant 0 : index
      %34 = vector.load %arg6[%c0_19, %c0_20] : memref<4x128xf32, #tpu.memory_space<vmem>>, vector<4x128xf32>
      tpu.vector_store %arg6[%c0_19, %c0_20], %33 {strides = array<i32>} : memref<4x128xf32, #tpu.memory_space<vmem>>, vector<4x128xf32>,
    } else {
    }
    %c0 = arith.constant 0 : index
    %c0_1 = arith.constant 0 : index
    %c0_2 = arith.constant 0 : index
    %3 = vector.load %arg1[%c0, %c0_1, %c0_2] : memref<4x128x128xf32, #tpu.memory_space<vmem>>, vector<4x128x128xf32>
    %4 = vector.shape_cast %3 : vector<4x128x128xf32> to vector<512x128xf32>
    %c0_3 = arith.constant 0 : index
    %c0_4 = arith.constant 0 : index
    %5 = vector.load %arg2[%c0_3, %c0_4] : memref<128x128xf32, #tpu.memory_space<vmem>>, vector<128x128xf32>
    %cst = arith.constant dense<0.000000e+00> : vector<512x128xf32>
    %6 = tpu.matmul %4, %5, %cst {dimension_numbers = #tpu.dot_dimension_numbers<[1], [0], [0], [1], [0, 0, 1, 1], [], []>} : vector<512x128xf32>, vector<128x128xf32>, vector<512x128xf32> -> vector<512x128xf32>
    %c0_5 = arith.constant 0 : index
    %c0_6 = arith.constant 0 : index
    %7 = vector.load %arg3[%c0_5, %c0_6] : memref<1x128xf32, #tpu.memory_space<vmem>>, vector<1x128xf32>
    %8 = vector.broadcast %7 : vector<1x128xf32> to vector<512x128xf32>
    %9 = arith.addf %6, %8 : vector<512x128xf32>
    %10 = math.tanh %9 : vector<512x128xf32>
    %c0_7 = arith.constant 0 : index
    %c0_8 = arith.constant 0 : index
    %11 = vector.load %arg4[%c0_7, %c0_8] : memref<1x128xf32, #tpu.memory_space<vmem>>, vector<1x128xf32>
    %12 = vector.broadcast %11 : vector<1x128xf32> to vector<512x128xf32>
    %13 = arith.mulf %10, %12 : vector<512x128xf32>
    %14 = vector.extract_strided_slice %13 {offsets = [0, 0], sizes = [128, 128], strides = [1, 1]} : vector<512x128xf32> to vector<128x128xf32>
    %cst_9 = arith.constant dense<0.000000e+00> : vector<128xf32>
    %15 = vector.multi_reduction <add>, %14, %cst_9 [0] : vector<128x128xf32> to vector<128xf32>
    %16 = vector.shape_cast %15 : vector<128xf32> to vector<1x128xf32>
    %17 = vector.extract_strided_slice %13 {offsets = [128, 0], sizes = [128, 128], strides = [1, 1]} : vector<512x128xf32> to vector<128x128xf32>
    %cst_10 = arith.constant dense<0.000000e+00> : vector<128xf32>
    %18 = vector.multi_reduction <add>, %17, %cst_10 [0] : vector<128x128xf32> to vector<128xf32>
    %19 = vector.shape_cast %18 : vector<128xf32> to vector<1x128xf32>
    %20 = vector.extract_strided_slice %13 {offsets = [256, 0], sizes = [128, 128], strides = [1, 1]} : vector<512x128xf32> to vector<128x128xf32>
    %cst_11 = arith.constant dense<0.000000e+00> : vector<128xf32>
    %21 = vector.multi_reduction <add>, %20, %cst_11 [0] : vector<128x128xf32> to vector<128xf32>
    %22 = vector.shape_cast %21 : vector<128xf32> to vector<1x128xf32>
    %23 = vector.extract_strided_slice %13 {offsets = [384, 0], sizes = [128, 128], strides = [1, 1]} : vector<512x128xf32> to vector<128x128xf32>
    %cst_12 = arith.constant dense<0.000000e+00> : vector<128xf32>
    %24 = vector.multi_reduction <add>, %23, %cst_12 [0] : vector<128x128xf32> to vector<128xf32>
    %25 = vector.shape_cast %24 : vector<128xf32> to vector<1x128xf32>
    %c0_13 = arith.constant 0 : index
    %c0_14 = arith.constant 0 : index
    %26 = vector.load %arg6[%c0_13, %c0_14] : memref<4x128xf32, #tpu.memory_space<vmem>>, vector<4x128xf32>
    %27 = tpu.concatenate %16, %19, %22, %25 in 0 : vector<1x128xf32>, vector<1x128xf32>, vector<1x128xf32>, vector<1x128xf32> -> vector<4x128xf32>
    %28 = arith.addf %26, %27 : vector<4x128xf32>
    %c0_15 = arith.constant 0 : index
    %c0_16 = arith.constant 0 : index
    %29 = vector.load %arg6[%c0_15, %c0_16] : memref<4x128xf32, #tpu.memory_space<vmem>>, vector<4x128xf32>
    tpu.vector_store %arg6[%c0_15, %c0_16], %28 {strides = array<i32>} : memref<4x128xf32, #tpu.memory_space<vmem>>, vector<4x128xf32>,
    %c3_i32 = arith.constant 3 : i32
    %30 = arith.cmpi eq, %arg0, %c3_i32 : i32
    %31 = arith.extui %30 : i1 to i32
    %c0_i32_17 = arith.constant 0 : i32
    %32 = arith.cmpi ne, %31, %c0_i32_17 : i32
    scf.if %32 {
      %c0_18 = arith.constant 0 : index
      %c0_19 = arith.constant 0 : index
      %33 = vector.load %arg6[%c0_18, %c0_19] : memref<4x128xf32, #tpu.memory_space<vmem>>, vector<4x128xf32>
      %cst_20 = arith.constant dense<0.000000e+00> : vector<4xf32>
      %34 = vector.multi_reduction <add>, %33, %cst_20 [1] : vector<4x128xf32> to vector<4xf32>
      %35 = vector.shape_cast %34 : vector<4xf32> to vector<4x1xf32>
      %cst_21 = arith.constant 0.001953125 : f32
      %36 = vector.broadcast %cst_21 : f32 to vector<4x1xf32>
      %37 = arith.mulf %35, %36 : vector<4x1xf32>
      %cst_22 = arith.constant dense<0xFF800000> : vector<1xf32>
      %38 = vector.multi_reduction <maximumf>, %37, %cst_22 [0] : vector<4x1xf32> to vector<1xf32>
      %39 = vector.shape_cast %38 : vector<1xf32> to vector<1x1xf32>
      %40 = vector.broadcast %39 : vector<1x1xf32> to vector<4x1xf32>
      %41 = arith.subf %37, %40 : vector<4x1xf32>
      %42 = math.exp %41 : vector<4x1xf32>
      %cst_23 = arith.constant dense<0.000000e+00> : vector<1xf32>
      %43 = vector.multi_reduction <add>, %42, %cst_23 [0] : vector<4x1xf32> to vector<1xf32>
      %44 = vector.shape_cast %43 : vector<1xf32> to vector<1x1xf32>
      %45 = vector.broadcast %44 : vector<1x1xf32> to vector<4x1xf32>
      %46 = arith.divf %42, %45 : vector<4x1xf32>
      %c0_24 = arith.constant 0 : index
      %c0_25 = arith.constant 0 : index
      %47 = vector.load %arg5[%c0_24, %c0_25] : memref<4x1xf32, #tpu.memory_space<vmem>>, vector<4x1xf32>
      tpu.vector_store %arg5[%c0_24, %c0_25], %46 {strides = array<i32>} : memref<4x1xf32, #tpu.memory_space<vmem>>, vector<4x1xf32>,
    } else {
    }
    return
  }
  func.func @transform_0(%arg0: i32) -> (i32, i32, i32) {
    %c0_i32 = arith.constant 0 : i32
    %c0_i32_0 = arith.constant 0 : i32
    %c0_i32_1 = arith.constant 0 : i32
    return %c0_i32, %arg0, %c0_i32_0 : i32, i32, i32
  }
  func.func @transform_1(%arg0: i32) -> (i32, i32) {
    %c0_i32 = arith.constant 0 : i32
    %c0_i32_0 = arith.constant 0 : i32
    %c0_i32_1 = arith.constant 0 : i32
    return %c0_i32, %c0_i32_0 : i32, i32
  }
  func.func @transform_2(%arg0: i32) -> (i32, i32) {
    %c0_i32 = arith.constant 0 : i32
    %c0_i32_0 = arith.constant 0 : i32
    %c0_i32_1 = arith.constant 0 : i32
    return %c0_i32, %c0_i32_0 : i32, i32
  }
  func.func @transform_3(%arg0: i32) -> (i32, i32) {
    %c0_i32 = arith.constant 0 : i32
    %c0_i32_0 = arith.constant 0 : i32
    %c0_i32_1 = arith.constant 0 : i32
    return %c0_i32, %c0_i32_0 : i32, i32
  }
  func.func @transform_4(%arg0: i32) -> (i32, i32) {
    %c0_i32 = arith.constant 0 : i32
    %c0_i32_0 = arith.constant 0 : i32
    %c0_i32_1 = arith.constant 0 : i32
    return %c0_i32, %c0_i32_0 : i32, i32
  }
}

</mosaic_0001>

<bundles_post_ra>
// kernel: tpu_custom_call.1
= control target key start
LH: loop header
LB: loop body
LE: loop exit
PB: predicated region body
PF: predicated region fallthrough
CT: control target
= control target key end

     0   :  { %9 = vsyncpa [#allocation4], 0  ;;  %s1571_s0 = inlined_call_operand.hbm [shape: f32[4,512,128], index: 0, kind: input, shape index: {}]   ;;  %s1572_s1 = inlined_call_operand.hbm [shape: f32[128,128], index: 1, kind: input, shape index: {}]   ;;  %s1573_s2 = inlined_call_operand.vmem [shape: f32[1,128], index: 2, kind: input, shape index: {}]   ;;  %s1574_s3 = inlined_call_operand.vmem [shape: f32[1,128], index: 3, kind: input, shape index: {}]   ;;  %s1575_s4 = inlined_call_operand.vmem [shape: f32[4,1], index: 4, kind: output, shape index: {}]  }
   0x1   :  { %11 = vsyncpa [#allocation4 + $0x1], 0 }
   0x2   :  { %12 = vsyncpa [#allocation6], 0  ;;  %s1229_s15 = smov 0   ;;  %s1231_s16 = smov 0  }
   0x3   :  { %s1233_s17 = smov 0   ;;  %s1235_s18 = smov 0  }
   0x4 LB: > { %s1248_s19 = sadd.s32 4294967295, %s1192_s18   ;;  %s1251_s20 = sadd.s32 1, %s1192_s18   ;;  %s1192_s18 = sphi %s1235_s18, %s1582_s18   ;;  %s1188_s17 = sphi %s1233_s17, %s1581_s17   ;;  %s1184_s16 = sphi %s1231_s16, %s1580_s16   ;;  %s1180_s15 = sphi %s1229_s15, %s1579_s15  }
   0x5   : > { %s22_s21 = ssub.s32 %s1192_s18, %s1251_s20  ;;  %s25_s22 = sadd.s32 1, %s1188_s17 }
   0x6   : > { %p23_p0 = scmp.eq.s32.totalorder %s22_s21, 0  ;;  %p32_p1 = scmp.ne.s32.totalorder %s1188_s17, %s1184_s16 }
   0x7   : > { %p33_p2 = scmp.eq.s32.totalorder %s1192_s18, 0  ;;  %p38_p3 = scmp.ne.s32.totalorder %s1184_s16, %s1180_s15 }
   0x8   : > { %s1261_s23 = scalar_select %p23_p0, %s1188_s17, %s25_s22  }
   0x9   : > { %p1263_p4 = por %p33_p2, %p32_p1  ;;  %p39_p5 = scmp.eq.s32.totalorder %s1248_s19, 0 }
   0xa   : > { %p865_p6 = scmp.ge.s32.totalorder %s1192_s18, 1  ;;  %p133_p7 = scmp.lt.s32.totalorder %s1192_s18, 5 }
   0xb   : > { %p1272_p8 = por %p39_p5, %p38_p3  ;;  %p866_p9 = scmp.ne.s32.totalorder %s1248_s19, 0 }
   0xc   : > { %p1277_p10 = pnand %p865_p6, %p133_p7  ;;  %s144_s29 = sshll.u32 %s1572_s1, 4  ;;  %s145_s29 = int_to_ptr.hbm [resolvable:$true] %s144_s29 }
   0xd   : > { %s1194_s30 = smov [#allocation5]   ;;  %s1195_s6 = smov 128  }
   0xe   : > { %p942_p11 = pneg %p1277_p10  ;;  %s146_s5 = sshll.u32 %s1194_s30, 4  ;;  %s147_s5 = int_to_ptr.vmem [resolvable:$true] %s146_s5 }
   0xf   : > { %s1196_s7 = smov 8   ;;  %p867_p13 = scmp.ge.s32.totalorder %s1192_s18, 4 }
  0x10   : > { %p943_p12 = pnand %p942_p11, %p39_p5 }
  0x11   : > { %162 = sbr.rel (%p867_p13) target bundleno = 36 (0x24), region = 28 }
  0x12   : > { %945 = dma.hbm_to_vmem [thread:$0]  (!%p943_p12), %s145_s29, 2048, %s147_s5, [#allocation6], %s1195_s6, %s1195_s6, %s1196_s7  }
  0x16   : > { %s166_s8 = sand.u32 1, %s1188_s17   ;;  %s880_s9 = sshll.u32 %s1192_s18, 7 }
  0x17   : > { %s868_s10 = sshll.u32 %s166_s8, 9  ;;  %s175_s13 = scalar_lea.hbm %s1571_s0, %s880_s9 }
  0x18   : > { %s931_s14 = scalar_select %p1263_p4, [#allocation0], [#allocation9] }
  0x19   : > { %s188_s15 = sshll.u32 %s175_s13, 4  ;;  %s170_s21 = scalar_lea.vmem [#allocation3], %s868_s10  ;;  %s189_s15 = int_to_ptr.hbm [resolvable:$true] %s188_s15 }
  0x1a   : > { %s190_s22 = sshll.u32 %s170_s21, 4  ;;  %s180_s27 = sld [smem:[%s931_s14]]   ;;  %s191_s22 = int_to_ptr.vmem [resolvable:$true] %s190_s22 }
  0x1b   : > { %s1197_s28 = smov 8192   ;;  %s1198_s18 = smov 2048  }
  0x1c   : > { %932 = sst [smem:[#allocation8]] (%p1263_p4), %s1197_s28  ;;  %s1199_s29 = smov 16  }
  0x1d   : > { %933 = sst [smem:[#allocation8 + $0x1]] (%p1263_p4), %s1198_s18  ;;  %s1200_s30 = smov 128  }
  0x1e   : > { %934 = sst [smem:[#allocation8 + $0x2]] (%p1263_p4), %s1199_s29  ;;  %s1201_s7 = smov 8  }
  0x1f   : > { %935 = sst [smem:[#allocation8 + $0x3]] (%p1263_p4), %s1200_s30  ;;  %s167_s9 = scalar_lea.sflag [#allocation4], %s166_s8 }
  0x20   : > { %s871_s5 = sshll.u32 %s180_s27, 26  ;;  %936 = sst [smem:[#allocation8 + $0x4]] (%p1263_p4), %s1200_s30 }
  0x21   : > { %s872_s6 = sadd.s32 134217728, %s871_s5  ;;  %937 = sst [smem:[#allocation8 + $0x5]] (%p1263_p4), %s1201_s7 }
  0x22   : > { %s1202_s10 = smov [#allocation7]  }
  0x23   : > { %938 = dma.general (%p1263_p4), %s189_s15, 8192, %s191_s22, %s167_s9, %s1202_s10, [#allocation8], %s872_s6, 0  }
  0x24 PF: > { %215 = sbr.rel (%p1277_p10) target bundleno = 550 (0x226), region = 36  ;;  %s217_s11 = sand.u32 (!%p1277_p10), 1, %s1184_s16  }
  0x25   : > { %s874_s12 = sshll.u32 (!%p1277_p10), %s217_s11, 9  ;;  %s218_s13 = scalar_lea.sflag (!%p1277_p10), [#allocation4], %s217_s11 }
  0x26   : > { %s1313_s14 = scalar_lea.vmem (!%p1277_p10), [#allocation3], %s874_s12 }
  0x29   : > { %1171 = dma.done.wait (%p1272_p8), %s218_s13, 8192  }
  0x2a   : > { %1173 = vsyncadd (%p1272_p8), %s218_s13, 4294959104 }
  0x2b   : > { %1175 = dma.done.wait (%p39_p5), [#allocation6], 2048  }
  0x2c   : > { %1177 = vsyncadd (%p39_p5), [#allocation6], 4294965248  ;;  %251 = sbr.rel (%p866_p9) target bundleno = 51 (0x33), region = 48 }
  0x31   : > { %v1203_v0 = vmov 0.0  }
  0x32   : > { %252 = vst [vmem:[#allocation2] sm:$0xf] %v1203_v0 }
  0x33 PF: > { %v332_v1 = vld [vmem:[#allocation5 + $0x78] sm:$0xff]  ;;  %v331_v2 = vld [vmem:[#allocation5 + $0x70] sm:$0xff]  ;;  %v330_v3 = vld [vmem:[#allocation5 + $0x68] sm:$0xff]  ;;  %vm763_vm0 = vcmask 1040384   ;;  %vm765_vm1 = vcmask 1041408   ;;  %vm767_vm2 = vcmask 1042432  }
  0x34   : > { %337 = vmatpush.msra.mxu0 %v332_v1  ;;  %881 = vmatpush.msra.mxu1 %v332_v1  ;;  %v329_v4 = vld [vmem:[#allocation5 + $0x60] sm:$0xff]  ;;  %v328_v5 = vld [vmem:[#allocation5 + $0x58] sm:$0xff]  ;;  %v327_v6 = vld [vmem:[#allocation5 + $0x50] sm:$0xff]  ;;  %p877_p0 = scmp.ne.s32.totalorder %s1248_s19, 3 }
  0x35   : > { %882 = vmatpush.msra.mxu2 %v332_v1  ;;  %883 = vmatpush.msra.mxu3 %v332_v1  ;;  %v326_v7 = vld [vmem:[#allocation5 + $0x48] sm:$0xff]  ;;  %v325_v8 = vld [vmem:[#allocation5 + $0x40] sm:$0xff]  ;;  %v324_v9 = vld [vmem:[#allocation5 + $0x38] sm:$0xff] }
  0x36   : > { %338 = vmatpush.msra.mxu0 %v331_v2  ;;  %884 = vmatpush.msra.mxu1 %v331_v2  ;;  %v323_v10 = vld [vmem:[#allocation5 + $0x30] sm:$0xff]  ;;  %v322_v11 = vld [vmem:[#allocation5 + $0x28] sm:$0xff]  ;;  %v321_v12 = vld [vmem:[#allocation5 + $0x20] sm:$0xff] }
  0x37   : > { %885 = vmatpush.msra.mxu2 %v331_v2  ;;  %886 = vmatpush.msra.mxu3 %v331_v2  ;;  %v320_v13 = vld [vmem:[#allocation5 + $0x18] sm:$0xff]  ;;  %v319_v14 = vld [vmem:[#allocation5 + $0x10] sm:$0xff]  ;;  %v318_v15 = vld [vmem:[#allocation5 + $0x8] sm:$0xff] }
  0x38   : > { %339 = vmatpush.msra.mxu0 %v330_v3  ;;  %887 = vmatpush.msra.mxu1 %v330_v3  ;;  %v317_v16 = vld [vmem:[#allocation5] sm:$0xff]  ;;  %v254_v21 = vld [vmem:[%s1313_s14 + $0x8] sm:$0xff]  ;;  %v255_v25 = vld [vmem:[%s1313_s14 + $0x10] sm:$0xff] }
  0x39   : > { %888 = vmatpush.msra.mxu2 %v330_v3  ;;  %889 = vmatpush.msra.mxu3 %v330_v3  ;;  %v253_v17 = vld [vmem:[%s1313_s14] sm:$0xff]  ;;  %v270_v22 = vld [vmem:[%s1313_s14 + $0x88] sm:$0xff]  ;;  %v271_v26 = vld [vmem:[%s1313_s14 + $0x90] sm:$0xff] }
  0x3a   : > { %340 = vmatpush.msra.mxu0 %v329_v4  ;;  %890 = vmatpush.msra.mxu1 %v329_v4  ;;  %v269_v18 = vld [vmem:[%s1313_s14 + $0x80] sm:$0xff]  ;;  %v286_v23 = vld [vmem:[%s1313_s14 + $0x108] sm:$0xff]  ;;  %v287_v27 = vld [vmem:[%s1313_s14 + $0x110] sm:$0xff] }
  0x3b   : > { %891 = vmatpush.msra.mxu2 %v329_v4  ;;  %892 = vmatpush.msra.mxu3 %v329_v4  ;;  %v285_v19 = vld [vmem:[%s1313_s14 + $0x100] sm:$0xff]  ;;  %v302_v24 = vld [vmem:[%s1313_s14 + $0x188] sm:$0xff]  ;;  %v303_v28 = vld [vmem:[%s1313_s14 + $0x190] sm:$0xff] }
  0x3c   : > { %341 = vmatpush.msra.mxu0 %v328_v5  ;;  %893 = vmatpush.msra.mxu1 %v328_v5  ;;  %v301_v20 = vld [vmem:[%s1313_s14 + $0x180] sm:$0xff]  ;;  %v256_v29 = vld [vmem:[%s1313_s14 + $0x18] sm:$0xff]  ;;  %v258_v37 = vld [vmem:[%s1313_s14 + $0x28] sm:$0xff] }
  0x3d   : > { %894 = vmatpush.msra.mxu2 %v328_v5  ;;  %895 = vmatpush.msra.mxu3 %v328_v5  ;;  %v272_v30 = vld [vmem:[%s1313_s14 + $0x98] sm:$0xff]  ;;  %v257_v33 = vld [vmem:[%s1313_s14 + $0x20] sm:$0xff]  ;;  %v274_v38 = vld [vmem:[%s1313_s14 + $0xa8] sm:$0xff] }
  0x3e   : > { %342 = vmatpush.msra.mxu0 %v327_v6  ;;  %896 = vmatpush.msra.mxu1 %v327_v6  ;;  %v288_v31 = vld [vmem:[%s1313_s14 + $0x118] sm:$0xff]  ;;  %v273_v34 = vld [vmem:[%s1313_s14 + $0xa0] sm:$0xff]  ;;  %v290_v39 = vld [vmem:[%s1313_s14 + $0x128] sm:$0xff] }
  0x3f   : > { %897 = vmatpush.msra.mxu2 %v327_v6  ;;  %898 = vmatpush.msra.mxu3 %v327_v6  ;;  %v304_v32 = vld [vmem:[%s1313_s14 + $0x198] sm:$0xff]  ;;  %v289_v35 = vld [vmem:[%s1313_s14 + $0x120] sm:$0xff]  ;;  %v306_v40 = vld [vmem:[%s1313_s14 + $0x1a8] sm:$0xff] }
  0x40   : > { %343 = vmatpush.msra.mxu0 %v326_v7  ;;  %899 = vmatpush.msra.mxu1 %v326_v7  ;;  %v305_v36 = vld [vmem:[%s1313_s14 + $0x1a0] sm:$0xff]  ;;  %v259_v41 = vld [vmem:[%s1313_s14 + $0x30] sm:$0xff]  ;;  %v260_v45 = vld [vmem:[%s1313_s14 + $0x38] sm:$0xff] }
  0x41   : > { %900 = vmatpush.msra.mxu2 %v326_v7  ;;  %901 = vmatpush.msra.mxu3 %v326_v7  ;;  %v275_v42 = vld [vmem:[%s1313_s14 + $0xb0] sm:$0xff]  ;;  %v276_v46 = vld [vmem:[%s1313_s14 + $0xb8] sm:$0xff]  ;;  %v261_v49 = vld [vmem:[%s1313_s14 + $0x40] sm:$0xff] }
  0x42   : > { %344 = vmatpush.msra.mxu0 %v325_v8  ;;  %902 = vmatpush.msra.mxu1 %v325_v8  ;;  %v291_v43 = vld [vmem:[%s1313_s14 + $0x130] sm:$0xff]  ;;  %v292_v47 = vld [vmem:[%s1313_s14 + $0x138] sm:$0xff]  ;;  %v277_v50 = vld [vmem:[%s1313_s14 + $0xc0] sm:$0xff] }
  0x43   : > { %903 = vmatpush.msra.mxu2 %v325_v8  ;;  %904 = vmatpush.msra.mxu3 %v325_v8  ;;  %v307_v44 = vld [vmem:[%s1313_s14 + $0x1b0] sm:$0xff]  ;;  %v308_v48 = vld [vmem:[%s1313_s14 + $0x1b8] sm:$0xff]  ;;  %v293_v51 = vld [vmem:[%s1313_s14 + $0x140] sm:$0xff] }
  0x44   : > { %345 = vmatpush.msra.mxu0 %v324_v9  ;;  %905 = vmatpush.msra.mxu1 %v324_v9  ;;  %v309_v52 = vld [vmem:[%s1313_s14 + $0x1c0] sm:$0xff]  ;;  %v262_v53 = vld [vmem:[%s1313_s14 + $0x48] sm:$0xff]  ;;  %v263_v57 = vld [vmem:[%s1313_s14 + $0x50] sm:$0xff] }
  0x45   : > { %906 = vmatpush.msra.mxu2 %v324_v9  ;;  %907 = vmatpush.msra.mxu3 %v324_v9  ;;  %v278_v54 = vld [vmem:[%s1313_s14 + $0xc8] sm:$0xff]  ;;  %v279_v58 = vld [vmem:[%s1313_s14 + $0xd0] sm:$0xff]  ;;  %v264_v61 = vld [vmem:[%s1313_s14 + $0x58] sm:$0xff] }
  0x46   : > { %346 = vmatpush.msra.mxu0 %v323_v10  ;;  %908 = vmatpush.msra.mxu1 %v323_v10  ;;  %v294_v55 = vld [vmem:[%s1313_s14 + $0x148] sm:$0xff]  ;;  %v295_v59 = vld [vmem:[%s1313_s14 + $0x150] sm:$0xff]  ;;  %v280_v62 = vld [vmem:[%s1313_s14 + $0xd8] sm:$0xff] }
  0x47   : > { %909 = vmatpush.msra.mxu2 %v323_v10  ;;  %910 = vmatpush.msra.mxu3 %v323_v10  ;;  %v310_v56 = vld [vmem:[%s1313_s14 + $0x1c8] sm:$0xff]  ;;  %v311_v60 = vld [vmem:[%s1313_s14 + $0x1d0] sm:$0xff]  ;;  %v296_v63 = vld [vmem:[%s1313_s14 + $0x158] sm:$0xff] }
  0x48   : > { %347 = vmatpush.msra.mxu0 %v322_v11  ;;  %911 = vmatpush.msra.mxu1 %v322_v11  ;;  %v312_v0 = vld [vmem:[%s1313_s14 + $0x1d8] sm:$0xff]  ;;  %v265_v1 = vld [vmem:[%s1313_s14 + $0x60] sm:$0xff]  ;;  %v266_v5 = vld [vmem:[%s1313_s14 + $0x68] sm:$0xff] }
  0x49   : > { %912 = vmatpush.msra.mxu2 %v322_v11  ;;  %913 = vmatpush.msra.mxu3 %v322_v11  ;;  %v281_v2 = vld [vmem:[%s1313_s14 + $0xe0] sm:$0xff]  ;;  %v282_v6 = vld [vmem:[%s1313_s14 + $0xe8] sm:$0xff]  ;;  %v267_v9 = vld [vmem:[%s1313_s14 + $0x70] sm:$0xff] }
  0x4a   : > { %348 = vmatpush.msra.mxu0 %v321_v12  ;;  %914 = vmatpush.msra.mxu1 %v321_v12  ;;  %v297_v3 = vld [vmem:[%s1313_s14 + $0x160] sm:$0xff]  ;;  %v298_v7 = vld [vmem:[%s1313_s14 + $0x168] sm:$0xff]  ;;  %v283_v10 = vld [vmem:[%s1313_s14 + $0xf0] sm:$0xff] }
  0x4b   : > { %915 = vmatpush.msra.mxu2 %v321_v12  ;;  %916 = vmatpush.msra.mxu3 %v321_v12  ;;  %v313_v4 = vld [vmem:[%s1313_s14 + $0x1e0] sm:$0xff]  ;;  %v314_v8 = vld [vmem:[%s1313_s14 + $0x1e8] sm:$0xff]  ;;  %v299_v11 = vld [vmem:[%s1313_s14 + $0x170] sm:$0xff] }
  0x4c   : > { %349 = vmatpush.msra.mxu0 %v320_v13  ;;  %917 = vmatpush.msra.mxu1 %v320_v13  ;;  %v315_v12 = vld [vmem:[%s1313_s14 + $0x1f0] sm:$0xff] }
  0x4d   : > { %918 = vmatpush.msra.mxu2 %v320_v13  ;;  %919 = vmatpush.msra.mxu3 %v320_v13  ;;  %v268_v13 = vld [vmem:[%s1313_s14 + $0x78] sm:$0xff] }
  0x4e   : > { %350 = vmatpush.msra.mxu0 %v319_v14  ;;  %920 = vmatpush.msra.mxu1 %v319_v14 }
  0x4f   : > { %921 = vmatpush.msra.mxu2 %v319_v14  ;;  %922 = vmatpush.msra.mxu3 %v319_v14  ;;  %v284_v14 = vld [vmem:[%s1313_s14 + $0xf8] sm:$0xff] }
  0x50   : > { %351 = vmatpush.msra.mxu0 %v318_v15  ;;  %923 = vmatpush.msra.mxu1 %v318_v15 }
  0x51   : > { %924 = vmatpush.msra.mxu2 %v318_v15  ;;  %925 = vmatpush.msra.mxu3 %v318_v15  ;;  %v300_v15 = vld [vmem:[%s1313_s14 + $0x178] sm:$0xff] }
  0x52   : > { %352 = vmatpush.msra.mxu0 %v317_v16  ;;  %926 = vmatpush.msra.mxu1 %v317_v16 }
  0x53   : > { %927 = vmatpush.msra.mxu2 %v317_v16  ;;  %928 = vmatpush.msra.mxu3 %v317_v16  ;;  %v316_v16 = vld [vmem:[%s1313_s14 + $0x1f8] sm:$0xff] }
  0x54   : > { %353 = vmatmul.f32.vlgmr.msra.gmra.mxu0 %v253_v17  ;;  %401 = vmatmul.f32.vlgmr.msra.gmra.mxu1 %v269_v18 }
  0x55   : > { %449 = vmatmul.f32.vlgmr.msra.gmra.mxu2 %v285_v19  ;;  %497 = vmatmul.f32.vlgmr.msra.gmra.mxu3 %v301_v20  ;;  %v1392_v19 = vld [vmem:[%s1573_s2] ss:$0 sm:$0xff] }
  0x5c   : > { %356 = vmatmul.f32.gmra.mxu0 %v254_v21  ;;  %404 = vmatmul.f32.gmra.mxu1 %v270_v22 }
  0x5d   : > { %452 = vmatmul.f32.gmra.mxu2 %v286_v23  ;;  %500 = vmatmul.f32.gmra.mxu3 %v302_v24 }
  0x64   : > { %359 = vmatmul.f32.gmra.mxu0 %v255_v25  ;;  %407 = vmatmul.f32.gmra.mxu1 %v271_v26 }
  0x65   : > { %455 = vmatmul.f32.gmra.mxu2 %v287_v27  ;;  %503 = vmatmul.f32.gmra.mxu3 %v303_v28 }
  0x6c   : > { %362 = vmatmul.f32.gmra.mxu0 %v256_v29  ;;  %410 = vmatmul.f32.gmra.mxu1 %v272_v30  ;;  %v1403_v30 = vld [vmem:[%s1574_s3] ss:$0 sm:$0xff] }
  0x6d   : > { %458 = vmatmul.f32.gmra.mxu2 %v288_v31  ;;  %506 = vmatmul.f32.gmra.mxu3 %v304_v32 }
  0x74   : > { %365 = vmatmul.f32.gmra.mxu0 %v257_v33  ;;  %413 = vmatmul.f32.gmra.mxu1 %v273_v34 }
  0x75   : > { %461 = vmatmul.f32.gmra.mxu2 %v289_v35  ;;  %509 = vmatmul.f32.gmra.mxu3 %v305_v36 }
  0x7c   : > { %368 = vmatmul.f32.gmra.mxu0 %v258_v37  ;;  %416 = vmatmul.f32.gmra.mxu1 %v274_v38 }
  0x7d   : > { %464 = vmatmul.f32.gmra.mxu2 %v290_v39  ;;  %512 = vmatmul.f32.gmra.mxu3 %v306_v40 }
  0x84   : > { %371 = vmatmul.f32.gmra.mxu0 %v259_v41  ;;  %419 = vmatmul.f32.gmra.mxu1 %v275_v42 }
  0x85   : > { %467 = vmatmul.f32.gmra.mxu2 %v291_v43  ;;  %515 = vmatmul.f32.gmra.mxu3 %v307_v44 }
  0x8c   : > { %374 = vmatmul.f32.gmra.mxu0 %v260_v45  ;;  %422 = vmatmul.f32.gmra.mxu1 %v276_v46 }
  0x8d   : > { %470 = vmatmul.f32.gmra.mxu2 %v292_v47  ;;  %518 = vmatmul.f32.gmra.mxu3 %v308_v48 }
  0x94   : > { %377 = vmatmul.f32.gmra.mxu0 %v261_v49  ;;  %425 = vmatmul.f32.gmra.mxu1 %v277_v50 }
  0x95   : > { %473 = vmatmul.f32.gmra.mxu2 %v293_v51  ;;  %521 = vmatmul.f32.gmra.mxu3 %v309_v52 }
  0x9c   : > { %380 = vmatmul.f32.gmra.mxu0 %v262_v53  ;;  %428 = vmatmul.f32.gmra.mxu1 %v278_v54 }
  0x9d   : > { %476 = vmatmul.f32.gmra.mxu2 %v294_v55  ;;  %524 = vmatmul.f32.gmra.mxu3 %v310_v56 }
  0xa4   : > { %383 = vmatmul.f32.gmra.mxu0 %v263_v57  ;;  %431 = vmatmul.f32.gmra.mxu1 %v279_v58 }
  0xa5   : > { %479 = vmatmul.f32.gmra.mxu2 %v295_v59  ;;  %527 = vmatmul.f32.gmra.mxu3 %v311_v60 }
  0xac   : > { %386 = vmatmul.f32.gmra.mxu0 %v264_v61  ;;  %434 = vmatmul.f32.gmra.mxu1 %v280_v62 }
  0xad   : > { %482 = vmatmul.f32.gmra.mxu2 %v296_v63  ;;  %530 = vmatmul.f32.gmra.mxu3 %v312_v0 }
  0xb4   : > { %389 = vmatmul.f32.gmra.mxu0 %v265_v1  ;;  %437 = vmatmul.f32.gmra.mxu1 %v281_v2 }
  0xb5   : > { %485 = vmatmul.f32.gmra.mxu2 %v297_v3  ;;  %533 = vmatmul.f32.gmra.mxu3 %v313_v4 }
  0xbc   : > { %392 = vmatmul.f32.gmra.mxu0 %v266_v5  ;;  %440 = vmatmul.f32.gmra.mxu1 %v282_v6 }
  0xbd   : > { %488 = vmatmul.f32.gmra.mxu2 %v298_v7  ;;  %536 = vmatmul.f32.gmra.mxu3 %v314_v8 }
  0xc4   : > { %395 = vmatmul.f32.gmra.mxu0 %v267_v9  ;;  %443 = vmatmul.f32.gmra.mxu1 %v283_v10 }
  0xc5   : > { %491 = vmatmul.f32.gmra.mxu2 %v299_v11  ;;  %539 = vmatmul.f32.gmra.mxu3 %v315_v12 }
  0xcc   : > { %398 = vmatmul.f32.gmra.mxu0 %v268_v13  ;;  %446 = vmatmul.f32.gmra.mxu1 %v284_v14 }
  0xcd   : > { %494 = vmatmul.f32.gmra.mxu2 %v300_v15  ;;  %542 = vmatmul.f32.gmra.mxu3 %v316_v16 }
  0xd1   : > { %v354_v17 = vpop.f32.mrf.mxu0  ;;  %v402_v18 = vpop.f32.mrf.mxu1 }
  0xd2   : > { %v355_v20 = vadd.f32 %v1392_v19, %v354_v17  ;;  %v403_v21 = vadd.f32 %v1392_v19, %v402_v18 }
  0xd4   : > { %992 = vtanh.f32 %v355_v20 }
  0xd5   : > { %994 = vtanh.f32 %v403_v21 }
  0xd8   : > { %v450_v22 = vpop.f32.mrf.mxu2  ;;  %v498_v23 = vpop.f32.mrf.mxu3 }
  0xd9   : > { %v357_v24 = vpop.f32.mrf.mxu0  ;;  %v405_v25 = vpop.f32.mrf.mxu1  ;;  %v451_v28 = vadd.f32 %v1392_v19, %v450_v22  ;;  %v499_v29 = vadd.f32 %v1392_v19, %v498_v23 }
  0xda   : > { %v358_v26 = vadd.f32 %v1392_v19, %v357_v24  ;;  %v406_v27 = vadd.f32 %v1392_v19, %v405_v25  ;;  %v993_v33 = vpop.eup %992 }
  0xdb   : > { %v995_v38 = vpop.eup %994  ;;  %v614_v43 = vmul.f32 %v993_v33, %v1403_v30 }
  0xdc   : > { %996 = vtanh.f32 %v358_v26  ;;  %v630_v45 = vmul.f32 %v995_v38, %v1403_v30 }
  0xdd   : > { %998 = vtanh.f32 %v406_v27 }
  0xde   : > { %1000 = vtanh.f32 %v451_v28 }
  0xdf   : > { %1002 = vtanh.f32 %v499_v29 }
  0xe0   : > { %v453_v31 = vpop.f32.mrf.mxu2  ;;  %v501_v32 = vpop.f32.mrf.mxu3 }
  0xe1   : > { %v454_v34 = vadd.f32 %v1392_v19, %v453_v31  ;;  %v502_v35 = vadd.f32 %v1392_v19, %v501_v32  ;;  %v360_v36 = vpop.f32.mrf.mxu0  ;;  %v408_v37 = vpop.f32.mrf.mxu1 }
  0xe2   : > { %v361_v39 = vadd.f32 %v1392_v19, %v360_v36  ;;  %v409_v40 = vadd.f32 %v1392_v19, %v408_v37  ;;  %v997_v41 = vpop.eup %996 }
  0xe3   : > { %1004 = vtanh.f32 %v454_v34  ;;  %v999_v42 = vpop.eup %998  ;;  %v615_v44 = vmul.f32 %v997_v41, %v1403_v30 }
  0xe4   : > { %1006 = vtanh.f32 %v502_v35  ;;  %v631_v46 = vmul.f32 %v999_v42, %v1403_v30  ;;  %v1001_v48 = vpop.eup %1000 }
  0xe5   : > { %1008 = vtanh.f32 %v361_v39  ;;  %v678_v47 = vadd.f32 %v615_v44, %v614_v43  ;;  %v1003_v50 = vpop.eup %1002  ;;  %v646_v59 = vmul.f32 %v1001_v48, %v1403_v30 }
  0xe6   : > { %1010 = vtanh.f32 %v409_v40  ;;  %v699_v49 = vadd.f32 %v631_v46, %v630_v45  ;;  %v662_v0 = vmul.f32 %v1003_v50, %v1403_v30 }
  0xe8   : > { %v456_v51 = vpop.f32.mrf.mxu2  ;;  %v504_v52 = vpop.f32.mrf.mxu3 }
  0xe9   : > { %v1005_v53 = vpop.eup %1004  ;;  %v457_v54 = vadd.f32 %v1392_v19, %v456_v51  ;;  %v505_v55 = vadd.f32 %v1392_v19, %v504_v52  ;;  %v363_v56 = vpop.f32.mrf.mxu0 }
  0xea   : > { %v411_v57 = vpop.f32.mrf.mxu1  ;;  %v1007_v58 = vpop.eup %1006  ;;  %v647_v60 = vmul.f32 %v1005_v53, %v1403_v30  ;;  %v364_v61 = vadd.f32 %v1392_v19, %v363_v56 }
  0xeb   : > { %v412_v62 = vadd.f32 %v1392_v19, %v411_v57  ;;  %v1009_v63 = vpop.eup %1008  ;;  %v663_v1 = vmul.f32 %v1007_v58, %v1403_v30  ;;  %1012 = vtanh.f32 %v457_v54 }
  0xec   : > { %v1011_v2 = vpop.eup %1010  ;;  %v720_v3 = vadd.f32 %v647_v60, %v646_v59  ;;  %v616_v4 = vmul.f32 %v1009_v63, %v1403_v30  ;;  %1014 = vtanh.f32 %v505_v55 }
  0xed   : > { %v741_v5 = vadd.f32 %v663_v1, %v662_v0  ;;  %v632_v6 = vmul.f32 %v1011_v2, %v1403_v30  ;;  %1016 = vtanh.f32 %v364_v61 }
  0xee   : > { %v679_v7 = vadd.f32 %v678_v47, %v616_v4  ;;  %1018 = vtanh.f32 %v412_v62 }
  0xef   : > { %v700_v8 = vadd.f32 %v699_v49, %v632_v6 }
  0xf0   : > { %v459_v9 = vpop.f32.mrf.mxu2  ;;  %v507_v10 = vpop.f32.mrf.mxu3 }
  0xf1   : > { %v1013_v11 = vpop.eup %1012  ;;  %v460_v12 = vadd.f32 %v1392_v19, %v459_v9  ;;  %v508_v13 = vadd.f32 %v1392_v19, %v507_v10  ;;  %v366_v14 = vpop.f32.mrf.mxu0 }
  0xf2   : > { %v414_v15 = vpop.f32.mrf.mxu1  ;;  %v1015_v16 = vpop.eup %1014  ;;  %v648_v17 = vmul.f32 %v1013_v11, %v1403_v30  ;;  %v367_v18 = vadd.f32 %v1392_v19, %v366_v14 }
  0xf3   : > { %v415_v20 = vadd.f32 %v1392_v19, %v414_v15  ;;  %v1017_v21 = vpop.eup %1016  ;;  %v664_v22 = vmul.f32 %v1015_v16, %v1403_v30  ;;  %1020 = vtanh.f32 %v460_v12 }
  0xf4   : > { %v1019_v23 = vpop.eup %1018  ;;  %v721_v24 = vadd.f32 %v720_v3, %v648_v17  ;;  %v617_v25 = vmul.f32 %v1017_v21, %v1403_v30  ;;  %1022 = vtanh.f32 %v508_v13 }
  0xf5   : > { %v742_v26 = vadd.f32 %v741_v5, %v664_v22  ;;  %v633_v27 = vmul.f32 %v1019_v23, %v1403_v30  ;;  %1024 = vtanh.f32 %v367_v18 }
  0xf6   : > { %v680_v28 = vadd.f32 %v679_v7, %v617_v25  ;;  %1026 = vtanh.f32 %v415_v20 }
  0xf7   : > { %v701_v29 = vadd.f32 %v700_v8, %v633_v27 }
  0xf8   : > { %v462_v31 = vpop.f32.mrf.mxu2  ;;  %v510_v32 = vpop.f32.mrf.mxu3 }
  0xf9   : > { %v1021_v33 = vpop.eup %1020  ;;  %v463_v34 = vadd.f32 %v1392_v19, %v462_v31  ;;  %v511_v35 = vadd.f32 %v1392_v19, %v510_v32  ;;  %v369_v36 = vpop.f32.mrf.mxu0 }
  0xfa   : > { %v417_v37 = vpop.f32.mrf.mxu1  ;;  %v1023_v38 = vpop.eup %1022  ;;  %v649_v39 = vmul.f32 %v1021_v33, %v1403_v30  ;;  %v370_v9 = vadd.f32 %v1392_v19, %v369_v36 }
  0xfb   : > { %v1025_v40 = vpop.eup %1024  ;;  %v665_v41 = vmul.f32 %v1023_v38, %v1403_v30  ;;  %1028 = vtanh.f32 %v463_v34  ;;  %v418_v12 = vadd.f32 %v1392_v19, %v417_v37 }
  0xfc   : > { %v1027_v42 = vpop.eup %1026  ;;  %v722_v43 = vadd.f32 %v721_v24, %v649_v39  ;;  %v618_v44 = vmul.f32 %v1025_v40, %v1403_v30  ;;  %1030 = vtanh.f32 %v511_v35 }
  0xfd   : > { %v743_v45 = vadd.f32 %v742_v26, %v665_v41  ;;  %v634_v46 = vmul.f32 %v1027_v42, %v1403_v30  ;;  %1032 = vtanh.f32 %v370_v9 }
  0xfe   : > { %v1437_v47 = vadd.f32 %v680_v28, %v618_v44  ;;  %1034 = vtanh.f32 %v418_v12 }
  0xff   : > { %v1439_v48 = vadd.f32 %v701_v29, %v634_v46 }
 0x100   : > { %v465_v49 = vpop.f32.mrf.mxu2  ;;  %v513_v50 = vpop.f32.mrf.mxu3 }
 0x101   : > { %v1029_v51 = vpop.eup %1028  ;;  %v372_v52 = vpop.f32.mrf.mxu0  ;;  %v466_v13 = vadd.f32 %v1392_v19, %v465_v49  ;;  %v514_v14 = vadd.f32 %v1392_v19, %v513_v50 }
 0x102   : > { %v420_v53 = vpop.f32.mrf.mxu1  ;;  %v1031_v54 = vpop.eup %1030  ;;  %v650_v55 = vmul.f32 %v1029_v51, %v1403_v30  ;;  %v373_v15 = vadd.f32 %v1392_v19, %v372_v52 }
 0x103   : > { %v666_v56 = vmul.f32 %v1031_v54, %v1403_v30  ;;  %v421_v16 = vadd.f32 %v1392_v19, %v420_v53  ;;  %1036 = vtanh.f32 %v466_v13  ;;  %v1033_v26 = vpop.eup %1032 }
 0x104   : > { %v1443_v57 = vadd.f32 %v722_v43, %v650_v55  ;;  %1038 = vtanh.f32 %v514_v14  ;;  %v1035_v28 = vpop.eup %1034  ;;  %v619_v52 = vmul.f32 %v1033_v26, %v1403_v30 }
 0x105   : > { %v1445_v58 = vadd.f32 %v743_v45, %v666_v56  ;;  %1040 = vtanh.f32 %v373_v15 }
 0x106   : > { %1042 = vtanh.f32 %v421_v16 }
 0x108   : > { %v468_v59 = vpop.f32.mrf.mxu2  ;;  %v516_v60 = vpop.f32.mrf.mxu3 }
 0x109   : > { %v375_v61 = vpop.f32.mrf.mxu0  ;;  %v469_v17 = vadd.f32 %v1392_v19, %v468_v59  ;;  %v517_v18 = vadd.f32 %v1392_v19, %v516_v60  ;;  %v1037_v31 = vpop.eup %1036 }
 0x10a   : > { %v423_v62 = vpop.f32.mrf.mxu1  ;;  %v376_v22 = vadd.f32 %v1392_v19, %v375_v61  ;;  %v1039_v33 = vpop.eup %1038 }
 0x10b   : > { %v424_v25 = vadd.f32 %v1392_v19, %v423_v62  ;;  %1044 = vtanh.f32 %v469_v17  ;;  %v1041_v35 = vpop.eup %1040 }
 0x10c   : > { %1046 = vtanh.f32 %v517_v18  ;;  %v1043_v37 = vpop.eup %1042 }
 0x10d   : > { %1048 = vtanh.f32 %v376_v22 }
 0x10e   : > { %1050 = vtanh.f32 %v424_v25 }
 0x110   : > { %v471_v63 = vpop.f32.mrf.mxu2  ;;  %v519_v0 = vpop.f32.mrf.mxu3 }
 0x111   : > { %v378_v1 = vpop.f32.mrf.mxu0  ;;  %v472_v27 = vadd.f32 %v1392_v19, %v471_v63  ;;  %v520_v29 = vadd.f32 %v1392_v19, %v519_v0  ;;  %v1045_v41 = vpop.eup %1044  ;;  %v682_v63 = vadd.f32 %v1437_v47, %v619_v52  ;;  %v635_v0 = vmul.f32 %v1035_v28, %v1403_v30 }
 0x112   : > { %v426_v2 = vpop.f32.mrf.mxu1  ;;  %v379_v32 = vadd.f32 %v1392_v19, %v378_v1  ;;  %v1047_v45 = vpop.eup %1046  ;;  %v620_v47 = vmul.f32 %v1041_v35, %v1403_v30  ;;  %v652_v14 = vmul.f32 %v1045_v41, %v1403_v30 }
 0x113   : > { %v427_v34 = vadd.f32 %v1392_v19, %v426_v2  ;;  %1052 = vtanh.f32 %v472_v27  ;;  %v1049_v49 = vpop.eup %1048  ;;  %v668_v15 = vmul.f32 %v1047_v45, %v1403_v30  ;;  %v703_v18 = vadd.f32 %v1439_v48, %v635_v0 }
 0x114   : > { %1054 = vtanh.f32 %v520_v29  ;;  %v1051_v51 = vpop.eup %1050  ;;  %v683_v27 = vadd.f32 %v682_v63, %v620_v47 }
 0x115   : > { %1056 = vtanh.f32 %v379_v32 }
 0x116   : > { %1058 = vtanh.f32 %v427_v34 }
 0x118   : > { %v474_v3 = vpop.f32.mrf.mxu2  ;;  %v522_v4 = vpop.f32.mrf.mxu3 }
 0x119   : > { %v381_v5 = vpop.f32.mrf.mxu0  ;;  %v475_v36 = vadd.f32 %v1392_v19, %v474_v3  ;;  %v523_v38 = vadd.f32 %v1392_v19, %v522_v4  ;;  %v1053_v54 = vpop.eup %1052 }
 0x11a   : > { %v429_v6 = vpop.f32.mrf.mxu1  ;;  %v382_v42 = vadd.f32 %v1392_v19, %v381_v5  ;;  %v1055_v56 = vpop.eup %1054  ;;  %v651_v5 = vmul.f32 %v1037_v31, %v1403_v30 }
 0x11b   : > { %v430_v46 = vadd.f32 %v1392_v19, %v429_v6  ;;  %1060 = vtanh.f32 %v475_v36  ;;  %v1057_v60 = vpop.eup %1056  ;;  %v667_v6 = vmul.f32 %v1039_v33, %v1403_v30 }
 0x11c   : > { %1062 = vtanh.f32 %v523_v38  ;;  %v1059_v62 = vpop.eup %1058  ;;  %v622_v45 = vmul.f32 %v1057_v60, %v1403_v30 }
 0x11d   : > { %1064 = vtanh.f32 %v382_v42 }
 0x11e   : > { %1066 = vtanh.f32 %v430_v46  ;;  %v638_v46 = vmul.f32 %v1059_v62, %v1403_v30 }
 0x120   : > { %v477_v7 = vpop.f32.mrf.mxu2  ;;  %v525_v8 = vpop.f32.mrf.mxu3 }
 0x121   : > { %v384_v10 = vpop.f32.mrf.mxu0  ;;  %v478_v50 = vadd.f32 %v1392_v19, %v477_v7  ;;  %v526_v53 = vadd.f32 %v1392_v19, %v525_v8  ;;  %v1061_v4 = vpop.eup %1060 }
 0x122   : > { %v432_v11 = vpop.f32.mrf.mxu1  ;;  %v385_v55 = vadd.f32 %v1392_v19, %v384_v10  ;;  %v1063_v10 = vpop.eup %1062 }
 0x123   : > { %v433_v59 = vadd.f32 %v1392_v19, %v432_v11  ;;  %1068 = vtanh.f32 %v478_v50  ;;  %v636_v11 = vmul.f32 %v1043_v37, %v1403_v30  ;;  %v1065_v13 = vpop.eup %1064  ;;  %v670_v52 = vmul.f32 %v1063_v10, %v1403_v30 }
 0x124   : > { %1070 = vtanh.f32 %v526_v53  ;;  %v1067_v17 = vpop.eup %1066 }
 0x125   : > { %1072 = vtanh.f32 %v385_v55  ;;  %v704_v28 = vadd.f32 %v703_v18, %v636_v11 }
 0x126   : > { %1074 = vtanh.f32 %v433_v59 }
 0x128   : > { %v480_v20 = vpop.f32.mrf.mxu2  ;;  %v528_v21 = vpop.f32.mrf.mxu3 }
 0x129   : > { %v387_v23 = vpop.f32.mrf.mxu0  ;;  %v481_v61 = vadd.f32 %v1392_v19, %v480_v20  ;;  %v529_v1 = vadd.f32 %v1392_v19, %v528_v21  ;;  %v621_v20 = vmul.f32 %v1049_v49, %v1403_v30  ;;  %v1069_v22 = vpop.eup %1068 }
 0x12a   : > { %v1456_v24 = vpop.f32.mrf.mxu1  ;;  %v388_v7 = vadd.f32 %v1392_v19, %v387_v23  ;;  %v724_v23 = vadd.f32 %v1443_v57, %v651_v5  ;;  %v1492_v26 = vpop.eup %1070  ;;  %v655_v10 = vmul.f32 %v1069_v22, %v1403_v30 }
 0x12b   : > { %v436_v12 = vadd.f32 %v1392_v19, %v1456_v24  ;;  %1076 = vtanh.f32 %v481_v61  ;;  %v745_v24 = vadd.f32 %v1445_v58, %v667_v6  ;;  %v1073_v29 = vpop.eup %1072  ;;  %v684_v57 = vadd.f32 %v683_v27, %v621_v20 }
 0x12c   : > { %1078 = vtanh.f32 %v529_v1  ;;  %v725_v31 = vadd.f32 %v724_v23, %v652_v14  ;;  %v1075_v34 = vpop.eup %1074  ;;  %v637_v58 = vmul.f32 %v1051_v51, %v1403_v30  ;;  %v654_v51 = vmul.f32 %v1061_v4, %v1403_v30 }
 0x12d   : > { %1080 = vtanh.f32 %v388_v7  ;;  %v746_v32 = vadd.f32 %v745_v24, %v668_v15  ;;  %v685_v1 = vadd.f32 %v684_v57, %v622_v45  ;;  %v639_v7 = vmul.f32 %v1067_v17, %v1403_v30 }
 0x12e   : > { %1082 = vtanh.f32 %v436_v12  ;;  %v705_v55 = vadd.f32 %v704_v28, %v637_v58  ;;  %v624_v47 = vmul.f32 %v1073_v29, %v1403_v30  ;;  %v640_v14 = vmul.f32 %v1075_v34, %v1403_v30 }
 0x12f   : > { %v671_v27 = vmul.f32 %v1492_v26, %v1403_v30 }
 0x130   : > { %v483_v39 = vpop.f32.mrf.mxu2  ;;  %v531_v40 = vpop.f32.mrf.mxu3 }
 0x131   : > { %v390_v43 = vpop.f32.mrf.mxu0  ;;  %v484_v16 = vadd.f32 %v1392_v19, %v483_v39  ;;  %v532_v21 = vadd.f32 %v1392_v19, %v531_v40  ;;  %v1498_v38 = vpop.eup %1076  ;;  %v653_v39 = vmul.f32 %v1053_v54, %v1403_v30  ;;  %v669_v40 = vmul.f32 %v1055_v56, %v1403_v30 }
 0x132   : > { %v438_v44 = vpop.f32.mrf.mxu1  ;;  %v391_v25 = vadd.f32 %v1392_v19, %v390_v43  ;;  %v623_v56 = vmul.f32 %v1065_v13, %v1403_v30 }
 0x133   : > { %v439_v48 = vadd.f32 %v1392_v19, %v438_v44  ;;  %1084 = vtanh.f32 %v484_v16  ;;  %v1503_v44 = vpop.eup %1078  ;;  %v726_v61 = vadd.f32 %v725_v31, %v653_v39  ;;  %v747_v62 = vadd.f32 %v746_v32, %v669_v40 }
 0x134   : > { %1086 = vtanh.f32 %v532_v21  ;;  %v1081_v50 = vpop.eup %1080  ;;  %v656_v31 = vmul.f32 %v1498_v38, %v1403_v30  ;;  %v672_v26 = vmul.f32 %v1503_v44, %v1403_v30 }
 0x135   : > { %1088 = vtanh.f32 %v391_v25  ;;  %v1083_v54 = vpop.eup %1082  ;;  %v727_v5 = vadd.f32 %v726_v61, %v654_v51  ;;  %v748_v6 = vadd.f32 %v747_v62, %v670_v52  ;;  %v625_v21 = vmul.f32 %v1081_v50, %v1403_v30 }
 0x136   : > { %1090 = vtanh.f32 %v439_v48  ;;  %v641_v28 = vmul.f32 %v1083_v54, %v1403_v30 }
 0x137   : > { %v728_v34 = vadd.f32 %v727_v5, %v655_v10  ;;  %v749_v40 = vadd.f32 %v748_v6, %v671_v27 }
 0x138   : > { %v486_v2 = vpop.f32.mrf.mxu2  ;;  %v534_v3 = vpop.f32.mrf.mxu3 }
 0x139   : > { %v393_v8 = vpop.f32.mrf.mxu0  ;;  %v487_v33 = vadd.f32 %v1392_v19, %v486_v2  ;;  %v535_v35 = vadd.f32 %v1392_v19, %v534_v3  ;;  %v1085_v60 = vpop.eup %1084  ;;  %v706_v2 = vadd.f32 %v705_v55, %v638_v46  ;;  %v729_v45 = vadd.f32 %v728_v34, %v656_v31 }
 0x13a   : > { %v441_v9 = vpop.f32.mrf.mxu1  ;;  %v394_v41 = vadd.f32 %v1392_v19, %v393_v8  ;;  %v1087_v0 = vpop.eup %1086 }
 0x13b   : > { %v442_v49 = vadd.f32 %v1392_v19, %v441_v9  ;;  %1092 = vtanh.f32 %v487_v33  ;;  %v1089_v4 = vpop.eup %1088  ;;  %v686_v9 = vadd.f32 %v685_v1, %v623_v56  ;;  %v707_v25 = vadd.f32 %v706_v2, %v639_v7 }
 0x13c   : > { %1094 = vtanh.f32 %v535_v35  ;;  %v1091_v8 = vpop.eup %1090  ;;  %v626_v32 = vmul.f32 %v1089_v4, %v1403_v30  ;;  %v673_v46 = vmul.f32 %v1087_v0, %v1403_v30 }
 0x13d   : > { %1096 = vtanh.f32 %v394_v41  ;;  %v687_v29 = vadd.f32 %v686_v9, %v624_v47  ;;  %v708_v57 = vadd.f32 %v707_v25, %v640_v14  ;;  %v642_v58 = vmul.f32 %v1091_v8, %v1403_v30 }
 0x13e   : > { %1098 = vtanh.f32 %v442_v49  ;;  %v657_v41 = vmul.f32 %v1085_v60, %v1403_v30  ;;  %v750_v60 = vadd.f32 %v749_v40, %v672_v26 }
 0x13f   : > { %v709_v38 = vadd.f32 %v708_v57, %v641_v28 }
 0x140   : > { %v489_v36 = vpop.f32.mrf.mxu2  ;;  %v537_v37 = vpop.f32.mrf.mxu3  ;;  %v730_v0 = vadd.f32 %v729_v45, %v657_v41  ;;  %v751_v7 = vadd.f32 %v750_v60, %v673_v46 }
 0x141   : > { %v396_v42 = vpop.f32.mrf.mxu0  ;;  %v490_v63 = vadd.f32 %v1392_v19, %v489_v36  ;;  %v538_v3 = vadd.f32 %v1392_v19, %v537_v37  ;;  %v1093_v13 = vpop.eup %1092  ;;  %v688_v36 = vadd.f32 %v687_v29, %v625_v21 }
 0x142   : > { %v444_v43 = vpop.f32.mrf.mxu1  ;;  %v397_v53 = vadd.f32 %v1392_v19, %v396_v42  ;;  %v1095_v20 = vpop.eup %1094  ;;  %v658_v61 = vmul.f32 %v1093_v13, %v1403_v30 }
 0x143   : > { %v445_v59 = vadd.f32 %v1392_v19, %v444_v43  ;;  %v1097_v24 = vpop.eup %1096  ;;  %v689_v49 = vadd.f32 %v688_v36, %v626_v32  ;;  %v674_v1 = vmul.f32 %v1095_v20, %v1403_v30 }
 0x144   : > { %1100 = vtanh.f32 %v397_v53  ;;  %v1099_v48 = vpop.eup %1098  ;;  %v627_v37 = vmul.f32 %v1097_v24, %v1403_v30  ;;  %v710_v53 = vadd.f32 %v709_v38, %v642_v58  ;;  %v731_v10 = vadd.f32 %v730_v0, %v658_v61 }
 0x145   : > { %1102 = vtanh.f32 %v445_v59  ;;  %v643_v42 = vmul.f32 %v1099_v48, %v1403_v30 }
 0x146   : > { %1104 = vtanh.f32 %v490_v63  ;;  %v690_v62 = vadd.f32 %v689_v49, %v627_v37 }
 0x147   : > { %1106 = vtanh.f32 %v538_v3  ;;  %v711_v2 = vadd.f32 %v710_v53, %v643_v42 }
 0x148   : > { %v492_v11 = vpop.f32.mrf.mxu2  ;;  %v540_v12 = vpop.f32.mrf.mxu3 }
 0x149   : > { %v493_v15 = vadd.f32 %v1392_v19, %v492_v11  ;;  %v541_v16 = vadd.f32 %v1392_v19, %v540_v12  ;;  %v399_v18 = vpop.f32.mrf.mxu0  ;;  %v752_v12 = vadd.f32 %v751_v7, %v674_v1 }
 0x14a   : > { %v447_v17 = vpop.f32.mrf.mxu1  ;;  %v400_v22 = vadd.f32 %v1392_v19, %v399_v18  ;;  %v1101_v33 = vpop.eup %1100 }
 0x14b   : > { %v448_v23 = vadd.f32 %v1392_v19, %v447_v17  ;;  %1108 = vtanh.f32 %v493_v15  ;;  %v1103_v35 = vpop.eup %1102  ;;  %v628_v50 = vmul.f32 %v1101_v33, %v1403_v30 }
 0x14c   : > { %1110 = vtanh.f32 %v541_v16  ;;  %v1105_v39 = vpop.eup %1104  ;;  %v644_v54 = vmul.f32 %v1103_v35, %v1403_v30 }
 0x14d   : > { %1112 = vtanh.f32 %v400_v22  ;;  %v1107_v43 = vpop.eup %1106  ;;  %v659_v4 = vmul.f32 %v1105_v39, %v1403_v30  ;;  %v691_v5 = vadd.f32 %v690_v62, %v628_v50 }
 0x14e   : > { %1114 = vtanh.f32 %v448_v23  ;;  %v712_v8 = vadd.f32 %v711_v2, %v644_v54 }
 0x14f   : > { %v732_v15 = vadd.f32 %v731_v10, %v659_v4 }
 0x150   : > { %v495_v51 = vpop.f32.mrf.mxu2  ;;  %v543_v44 = vpop.f32.mrf.mxu3 }
 0x151   : > { %v1109_v52 = vpop.eup %1108  ;;  %v496_v55 = vadd.f32 %v1392_v19, %v495_v51  ;;  %v544_v56 = vadd.f32 %v1392_v19, %v543_v44  ;;  %v675_v19 = vmul.f32 %v1107_v43, %v1403_v30  ;;  %v762_v51 = vld [vmem:[#allocation2] sm:$0xf] }
 0x152   : > { %v1111_v59 = vpop.eup %1110  ;;  %v660_v47 = vmul.f32 %v1109_v52, %v1403_v30 }
 0x153   : > { %v1113_v63 = vpop.eup %1112  ;;  %1116 = vtanh.f32 %v496_v55  ;;  %v676_v13 = vmul.f32 %v1111_v59, %v1403_v30  ;;  %v753_v17 = vadd.f32 %v752_v12, %v675_v19 }
 0x154   : > { %v1115_v3 = vpop.eup %1114  ;;  %v629_v6 = vmul.f32 %v1113_v63, %v1403_v30  ;;  %1118 = vtanh.f32 %v544_v56  ;;  %v733_v22 = vadd.f32 %v732_v15, %v660_v47 }
 0x155   : > { %v645_v9 = vmul.f32 %v1115_v3, %v1403_v30  ;;  %v754_v25 = vadd.f32 %v753_v17, %v676_v13 }
 0x156   : > { %v692_v11 = vadd.f32 %v691_v5, %v629_v6 }
 0x157   : > { %v713_v14 = vadd.f32 %v712_v8, %v645_v9 }
 0x158   : > { %v693_v16 = vrot.slane %v692_v11, 4 }
 0x159   : > { %v1117_v18 = vpop.eup %1116  ;;  %v714_v20 = vrot.slane %v713_v14, 4 }
 0x15a   : > { %v1119_v21 = vpop.eup %1118  ;;  %v694_v23 = vadd.f32 %v693_v16, %v692_v11  ;;  %v661_v24 = vmul.f32 %v1117_v18, %v1403_v30 }
 0x15b   : > { %v715_v27 = vadd.f32 %v714_v20, %v713_v14  ;;  %v677_v28 = vmul.f32 %v1119_v21, %v1403_v30 }
 0x15c   : > { %v695_v48 = vrot.slane %v694_v23, 2  ;;  %v734_v29 = vadd.f32 %v733_v22, %v661_v24 }
 0x15d   : > { %v716_v31 = vrot.slane %v715_v27, 2  ;;  %v755_v32 = vadd.f32 %v754_v25, %v677_v28 }
 0x15e   : > { %v696_v33 = vadd.f32 %v695_v48, %v694_v23  ;;  %v735_v34 = vrot.slane %v734_v29, 4 }
 0x15f   : > { %v717_v57 = vadd.f32 %v716_v31, %v715_v27  ;;  %v756_v58 = vrot.slane %v755_v32, 4 }
 0x160   : > { %v697_v35 = vrot.slane %v696_v33, 1  ;;  %v736_v26 = vadd.f32 %v735_v34, %v734_v29 }
 0x161   : > { %v718_v36 = vrot.slane %v717_v57, 1  ;;  %v757_v37 = vadd.f32 %v756_v58, %v755_v32 }
 0x162   : > { %v698_v39 = vadd.f32 %v697_v35, %v696_v33  ;;  %v737_v40 = vrot.slane %v736_v26, 2 }
 0x163   : > { %v719_v38 = vadd.f32 %v718_v36, %v717_v57  ;;  %v758_v41 = vrot.slane %v757_v37, 2 }
 0x164   : > { %v738_v42 = vadd.f32 %v737_v40, %v736_v26 }
 0x165   : > { %v764_v43 = vsel %vm763_vm0, %v698_v39, %v719_v38  ;;  %v759_v30 = vadd.f32 %v758_v41, %v757_v37 }
 0x166   : > { %v739_v45 = vrot.slane %v738_v42, 1 }
 0x167   : > { %v760_v46 = vrot.slane %v759_v30, 1 }
 0x168   : > { %v740_v49 = vadd.f32 %v739_v45, %v738_v42 }
 0x169   : > { %v761_v50 = vadd.f32 %v760_v46, %v759_v30 }
 0x16a   : > { %v766_v44 = vsel %vm765_vm1, %v764_v43, %v740_v49  ;;  %774 = sbr.rel (%p877_p0) target bundleno = 550 (0x226), region = 52 }
 0x16b   : > { %v768_v52 = vsel %vm767_vm2, %v766_v44, %v761_v50 }
 0x16c   : > { %v769_v53 = vadd.f32 %v768_v52, %v762_v51 }
 0x16e   : > { %770 = vst [vmem:[#allocation2] sm:$0xf] %v769_v53 }
 0x16f   : > { %vm776_vm3 = vcmask 1043456   ;;  %vm813_vm8 = vcmask 3072  }
 0x175   : > { %v775_v54 = vld [vmem:[#allocation2] sm:$0xf] }
 0x176   : > { %v777_v55 = vsel %vm776_vm3, %v775_v54, 0.0 }
 0x177   : > { %778 = vadd.xlane.f32.xlu0 %v777_v55 }
 0x1ea   : > { %v779_v56 = vpop.xlane.xlu0 %778 }
 0x1eb   : > { %v780_v59 = vmul.f32 0.001953125, %v779_v56 }
 0x1ed   : > { %v781_v60 = vsel %vm776_vm3, %v780_v59, -inf }
 0x1ee   : > { %v782_v61 = vrot.slane %v781_v60, 4 }
 0x1f0   : > { %v783_v62 = vmax.f32 %v781_v60, %v782_v61 }
 0x1f2   : > { %v784_v63 = vrot.slane %v783_v62, 2 }
 0x1f4   : > { %v785_v0 = vmax.f32 %v783_v62, %v784_v63 }
 0x1f6   : > { %v786_v1 = vrot.slane %v785_v0, 1 }
 0x1f8   : > { %v787_v2 = vmax.f32 %v785_v0, %v786_v1 }
 0x1fa   : > { %v788_v3 = vsub.f32 %v780_v59, %v787_v2 }
 0x1fc   : > { %v789_v4 = vmul.f32 1.442695, %v788_v3 }
 0x1fe   : > { %1120 = vpow2.f32 %v789_v4 }
 0x204   : > { %v1121_v5 = vpop.eup %1120 }
 0x205   : > { %v791_v6 = vsel %vm776_vm3, %v1121_v5, 0.0 }
 0x206   : > { %v792_v7 = vrot.slane %v791_v6, 4 }
 0x208   : > { %v793_v19 = vadd.f32 %v792_v7, %v791_v6 }
 0x20a   : > { %v794_v8 = vrot.slane %v793_v19, 2 }
 0x20c   : > { %v795_v9 = vadd.f32 %v794_v8, %v793_v19 }
 0x20e   : > { %v796_v10 = vrot.slane %v795_v9, 1 }
 0x210   : > { %v797_v47 = vadd.f32 %v796_v10, %v795_v9 }
 0x212   : > { %1122 = vrcp.f32 %v797_v47  ;;  %v809_v14 = vand.u32 2147483648, %v797_v47  ;;  %v807_v16 = vand.u32 2147483647, %v797_v47  ;;  %vm803_vm5 = vweird.f32 %v797_v47 }
 0x214   : > { %v810_v17 = vor.u32 1.1754944e-38, %v809_v14  ;;  %vm808_vm7 = vcmp.eq.f32.partialorder %v807_v16, 8.507059e+37 }
 0x218   : > { %v1123_v11 = vpop.eup %1122 }
 0x219   : > { %v799_v12 = vmul.f32 %v1123_v11, %v797_v47  ;;  %vm804_vm4 = vweird.f32 %v1123_v11 }
 0x21a   : > { %vm805_vm6 = vmor %vm803_vm5, %vm804_vm4 }
 0x21b   : > { %v800_v13 = vsub.f32 1.0, %v799_v12 }
 0x21d   : > { %v801_v15 = vmul.f32 %v1123_v11, %v800_v13 }
 0x21f   : > { %v802_v18 = vadd.f32 %v1123_v11, %v801_v15 }
 0x221   : > { %v806_v20 = vsel %vm805_vm6, %v1123_v11, %v802_v18 }
 0x222   : > { %v811_v21 = vsel %vm808_vm7, %v810_v17, %v806_v20 }
 0x223   : > { %v812_v22 = vmul.f32 %v1121_v5, %v811_v21 }
 0x225   : > { %814 = vst.msk [vmem:[%s1575_s4] sm:$0xf] %vm813_vm8, %v812_v22 }
 0x226 PF: > { %p15_p1 = scmp.ge.s32.totalorder %s1251_s20, 6   ;;  %s1579_s15 = smov %s1184_s16 }
 0x227   : > { %s1580_s16 = smov %s1188_s17  ;;  %s1581_s17 = smov %s1261_s23 }
 0x228   : > { %s1582_s18 = smov %s1251_s20  ;;  %17 = sbr.rel (!%p15_p1) target bundleno = 4 (0x4), region = 89 }
 0x22d   :  { %826 = vsyncpa [#allocation4], 1 }
 0x22e   :  { %828 = vsyncpa [#allocation4 + $0x1], 1 }
 0x22f   :  { %829 = vsyncpa [#allocation6], 1 }

</bundles_post_ra>
